<compile_context>
chip_gen: v7x
topology: tpu7x:2x2x1
jax: 0.10.0
libtpu: 0.0.40
codegen_flags: <defaults>
</compile_context>

<pallas_src>
import math

import jax
import jax.numpy as jnp
from jax.experimental import pallas as pl
from jax.experimental.pallas import tpu as pltpu


def _pos_enc_kernel(x_ref, w_ref, b_ref, o_ref):
    # x_ref: (tile_r, 3*pack)   packed point tile
    # w_ref: (3*pack, pack*d)   (block-diagonal) projection weight, resident
    # b_ref: (1, pack*d)        (tiled) bias
    # o_ref: (tile_r, pack*d)   lane-dense output tile
    #
    # Mem-bound kernel: whether this runs on the MXU or as 3*pack VPU FMAs is
    # irrelevant to wall clock; a single dot is the simplest/most robust form.
    acc = jnp.dot(x_ref[...], w_ref[...], preferred_element_type=jnp.float32)
    o_ref[...] = (acc + b_ref[...]).astype(o_ref.dtype)


def _round_up(x, m):
    return ((x + m - 1) // m) * m


def positional_encoding_3d(points, weight, bias, *, tile_m=1024, out_dtype=None,
                           vmem_budget_bytes=40 * 1024 * 1024):
    """points: [B, N, 3]; weight: [3, d_model]; bias: [d_model] -> [B, N, d_model]."""
    B, N, C = points.shape
    assert C == 3
    d_in, d_model = weight.shape
    assert d_in == 3
    out_dtype = points.dtype if out_dtype is None else out_dtype
    M = B * N

    # Lane packing: present a 128-lane-dense output when d_model < 128.
    pack = 128 // d_model if (d_model < 128 and 128 % d_model == 0) else 1
    packed_d = pack * d_model
    granule = 8 * pack                     # tile_m must be a multiple of this

    # ---- pick the row tile (VMEM-budgeted; v7x has only 64 MiB / TC) -------
    out_itemsize = jnp.dtype(out_dtype).itemsize

    def _buf_bytes(t):
        tr = t // pack
        in_b = tr * 128 * 4                              # lane-padded input tile
        out_b = tr * _round_up(packed_d, 128) * out_itemsize
        return 2 * (in_b + out_b)                        # double-buffered

    tile_m = max(granule, (int(tile_m) // granule) * granule)
    while _buf_bytes(tile_m) > vmem_budget_bytes and tile_m > granule:
        tile_m = max(granule, (tile_m // 2 // granule) * granule)
    # Keep >= 2 grid steps when possible (megacore sharding on v7x).
    if M > granule and pl.cdiv(M, tile_m) < 2:
        tile_m = _round_up(pl.cdiv(M, 2), granule)

    M_pad = _round_up(max(M, granule), tile_m)
    tile_r = tile_m // pack
    rows = M_pad // pack
    grid = M_pad // tile_m

    # ---- pack operands ------------------------------------------------------
    x_flat = points.reshape(M, 3)
    if M_pad != M:
        x_flat = jnp.pad(x_flat, ((0, M_pad - M), (0, 0)))
    x_packed = x_flat.reshape(rows, 3 * pack)            # free row-major reshape

    if pack > 1:
        # Block-diagonal weight so the packed matmul equals per-point x @ W.
        w_use = jnp.zeros((3 * pack, packed_d), weight.dtype)
        for p in range(pack):
            w_use = w_use.at[3 * p:3 * (p + 1),
                             p * d_model:(p + 1) * d_model].set(weight)
        b_use = jnp.tile(bias.reshape(1, d_model), (1, pack))
    else:
        w_use = weight
        b_use = bias.reshape(1, d_model)

    out_packed = pl.pallas_call(
        _pos_enc_kernel,
        out_shape=jax.ShapeDtypeStruct((rows, packed_d), out_dtype),
        grid_spec=pltpu.PrefetchScalarGridSpec(
            num_scalar_prefetch=0,
            grid=(grid,),
            in_specs=[
                pl.BlockSpec((tile_r, 3 * pack), lambda i: (i, 0)),   # points tile
                pl.BlockSpec((3 * pack, packed_d), lambda i: (0, 0)),  # weight
                pl.BlockSpec((1, packed_d), lambda i: (0, 0)),         # bias
            ],
            out_specs=pl.BlockSpec((tile_r, packed_d), lambda i: (i, 0)),
        ),
        compiler_params=pltpu.CompilerParams(
            dimension_semantics=("parallel",),
            vmem_limit_bytes=48 * 1024 * 1024,
        ),
    )(x_packed, w_use, b_use)

    out_flat = out_packed.reshape(M_pad, d_model)
    if M_pad != M:
        out_flat = out_flat[:M]
    return out_flat.reshape(B, N, d_model)


def init_params(key, d_model):
    """Deterministic init mimicking nn.Linear(3, d_model): U(-1/sqrt(3), 1/sqrt(3))."""
    kw, kb = jax.random.split(key)
    bound = 1.0 / math.sqrt(3.0)
    # Stored as [in=3, out=d_model] (transpose of PyTorch's [out, in]).
    weight = jax.random.uniform(kw, (3, d_model), jnp.float32, -bound, bound)
    bias = jax.random.uniform(kb, (d_model,), jnp.float32, -bound, bound)
    return weight, bias


if __name__ == "__main__":
    key = jax.random.PRNGKey(0)
    k_pts, k_par = jax.random.split(key)

    B, N, d_model = 2, 64, 32
    points = jax.random.normal(k_pts, (B, N, 3), dtype=jnp.float32)
    weight, bias = init_params(k_par, d_model)

    out = positional_encoding_3d(points, weight, bias)
    out = jax.block_until_ready(out)
    ref = points @ weight + bias
    assert out.shape == (B, N, d_model)
    assert jnp.allclose(out, ref, atol=1e-5, rtol=1e-5)

    # Ragged shape (B*N not a multiple of the tile) exercises the padding path.
    points2 = jax.random.normal(k_pts, (1, 100, 3), dtype=jnp.float32)
    out2 = jax.block_until_ready(positional_encoding_3d(points2, weight, bias))
    ref2 = points2 @ weight + bias
    assert out2.shape == (1, 100, d_model)
    assert jnp.allclose(out2, ref2, atol=1e-5, rtol=1e-5)

    print("KERNEL_OK")
</pallas_src>

<mosaic_0001>
module attributes {stable_mosaic.version = 11 : i64} {
  func.func @_pos_enc_kernel(%arg0: i32, %arg1: memref<16x12xf32, #tpu.memory_space<vmem>>, %arg2: memref<12x128xf32, #tpu.memory_space<vmem>>, %arg3: memref<1x128xf32, #tpu.memory_space<vmem>>, %arg4: memref<16x128xf32, #tpu.memory_space<vmem>>) attributes {dimension_semantics = [#tpu.dimension_semantics<parallel>], iteration_bounds = array<i64: 2>, scalar_prefetch = 0 : i64, scratch_operands = 0 : i64, tpu.core_type = #tpu.core_type<tc>, window_params = [{transform_indices = @transform_0, window_bounds = array<i64: 16, 12>}, {pipeline_mode = #tpu.pipeline_mode<synchronous>, transform_indices = @transform_1, window_bounds = array<i64: 12, 128>}, {pipeline_mode = #tpu.pipeline_mode<synchronous>, transform_indices = @transform_2, window_bounds = array<i64: 1, 128>}, {transform_indices = @transform_3, window_bounds = array<i64: 16, 128>}]} {
    %c0 = arith.constant 0 : index
    %c0_0 = arith.constant 0 : index
    %0 = vector.load %arg1[%c0, %c0_0] : memref<16x12xf32, #tpu.memory_space<vmem>>, vector<16x12xf32>
    %c0_1 = arith.constant 0 : index
    %c0_2 = arith.constant 0 : index
    %1 = vector.load %arg2[%c0_1, %c0_2] : memref<12x128xf32, #tpu.memory_space<vmem>>, vector<12x128xf32>
    %cst = arith.constant dense<0.000000e+00> : vector<16x128xf32>
    %2 = tpu.matmul %0, %1, %cst {dimension_numbers = #tpu.dot_dimension_numbers<[1], [0], [0], [1], [0, 0, 1, 1], [], []>} : vector<16x12xf32>, vector<12x128xf32>, vector<16x128xf32> -> vector<16x128xf32>
    %c0_3 = arith.constant 0 : index
    %c0_4 = arith.constant 0 : index
    %3 = vector.load %arg3[%c0_3, %c0_4] : memref<1x128xf32, #tpu.memory_space<vmem>>, vector<1x128xf32>
    %4 = vector.broadcast %3 : vector<1x128xf32> to vector<16x128xf32>
    %5 = arith.addf %2, %4 : vector<16x128xf32>
    %c0_5 = arith.constant 0 : index
    %c0_6 = arith.constant 0 : index
    %6 = vector.load %arg4[%c0_5, %c0_6] : memref<16x128xf32, #tpu.memory_space<vmem>>, vector<16x128xf32>
    tpu.vector_store %arg4[%c0_5, %c0_6], %5 {strides = array<i32>} : memref<16x128xf32, #tpu.memory_space<vmem>>, vector<16x128xf32>,
    return
  }
  func.func @transform_0(%arg0: i32) -> (i32, i32) {
    %c0_i32 = arith.constant 0 : i32
    %c0_i32_0 = arith.constant 0 : i32
    return %arg0, %c0_i32 : i32, i32
  }
  func.func @transform_1(%arg0: i32) -> (i32, i32) {
    %c0_i32 = arith.constant 0 : i32
    %c0_i32_0 = arith.constant 0 : i32
    %c0_i32_1 = arith.constant 0 : i32
    return %c0_i32, %c0_i32_0 : i32, i32
  }
  func.func @transform_2(%arg0: i32) -> (i32, i32) {
    %c0_i32 = arith.constant 0 : i32
    %c0_i32_0 = arith.constant 0 : i32
    %c0_i32_1 = arith.constant 0 : i32
    return %c0_i32, %c0_i32_0 : i32, i32
  }
  func.func @transform_3(%arg0: i32) -> (i32, i32) {
    %c0_i32 = arith.constant 0 : i32
    %c0_i32_0 = arith.constant 0 : i32
    return %arg0, %c0_i32 : i32, i32
  }
}

</mosaic_0001>

<bundles_post_ra>
// kernel: tpu_custom_call.1
= control target key start
LH: loop header
LB: loop body
LE: loop exit
PB: predicated region body
PF: predicated region fallthrough
CT: control target
= control target key end

     0   :  { %8 = vsyncpa [#allocation3], 0  ;;  %s622_s0 = inlined_call_operand.vmem [shape: f32[32,12], index: 0, kind: input, shape index: {}]   ;;  %s623_s1 = inlined_call_operand.vmem [shape: f32[12,128], index: 1, kind: input, shape index: {}]   ;;  %s624_s2 = inlined_call_operand.vmem [shape: f32[1,128], index: 2, kind: input, shape index: {}]   ;;  %s625_s3 = inlined_call_operand.hbm [shape: f32[32,128], index: 3, kind: output, shape index: {}]  }
   0x1   :  { %10 = vsyncpa [#allocation3 + $0x1], 0  ;;  %s511_s12 = smov 0   ;;  %s513_s13 = smov 0  }
   0x2   :  { %s515_s14 = smov 0   ;;  %s517_s15 = smov 0  }
   0x3 LB: > { %s532_s16 = sadd.s32 4294967295, %s485_s15   ;;  %s347_s17 = sadd.s32 4294967294, %s485_s15   ;;  %s485_s15 = sphi %s517_s15, %s631_s15   ;;  %s481_s14 = sphi %s515_s14, %s630_s14   ;;  %s477_s13 = sphi %s513_s13, %s629_s13   ;;  %s473_s12 = sphi %s511_s12, %s628_s12  }
   0x4   : > { %s536_s18 = sadd.s32 1, %s485_s15   ;;  %s91_s19 = sadd.s32 1, %s481_s14 }
   0x5   : > { %s88_s20 = ssub.s32 %s485_s15, %s536_s18  ;;  %p101_p0 = scmp.ne.s32.totalorder %s481_s14, %s477_s13 }
   0x6   : > { %p89_p1 = scmp.eq.s32.totalorder %s88_s20, 0  ;;  %p102_p2 = scmp.eq.s32.totalorder %s532_s16, 1 }
   0x7   : > { %p107_p3 = scmp.ne.s32.totalorder %s477_s13, %s473_s12  ;;  %p108_p4 = scmp.eq.s32.totalorder %s347_s17, 1 }
   0x8   : > { %s547_s21 = scalar_select %p89_p1, %s481_s14, %s91_s19  }
   0x9   : > { %p549_p5 = por %p102_p2, %p101_p0  ;;  %p553_p6 = por %p108_p4, %p107_p3 }
   0xa   : > { %p350_p7 = scmp.ge.s32.totalorder %s485_s15, 1  ;;  %p141_p8 = scmp.lt.s32.totalorder %s485_s15, 3 }
   0xc   : > { %p142_p9 = pnand %p350_p7, %p141_p8 }
   0xd   : > { %v174_v0 = vld [vmem:[%s623_s1] sm:$0xff] (!%p142_p9)  ;;  %v175_v1 = vld [vmem:[%s623_s1 + $0x8] sm:$0xf] (!%p142_p9)  ;;  %vm190_vm0 = vcmask (!%p142_p9), 1043456   ;;  %s352_s28 = sshll.u32 (!%p142_p9), %s532_s16, 1  ;;  %vm487_vm1 = vmmov (!%p142_p9), 1  }
   0xe   : > { %145 = sbr.rel (%p142_p9) target bundleno = 256 (0x100), region = 32  ;;  %v375_v2 = vpack.c.bf16 (!%p142_p9), %v175_v1, %v174_v0  ;;  %vm376_vm2 = vmpackc.low (!%p142_p9), %vm190_vm0, %vm487_vm1  ;;  %p166_p10 = scmp.lt.s32.totalorder (!%p142_p9), %s352_s28, 3  ;;  %vm183_vm3 = vcmask (!%p142_p9), 97280   ;;  %v354_v5 = vld [vmem:[%s624_s2] ss:$0 sm:$0xff] (!%p142_p9) }
   0xf   : > { %s162_s6 = sand.u32 (!%p142_p9), 1, %s477_s13   ;;  %s363_s17 = sshll.u32 (!%p142_p9), %s532_s16, 8 }
  0x10   : > { %377 = vmatprep.subr.msk.bf16.mxu0 (!%p142_p9), %vm376_vm2, %v375_v2  ;;  %s351_s7 = sshll.u32 (!%p142_p9), %s162_s6, 4  ;;  %s579_s24 = scalar_lea.hbm (!%p142_p9), %s625_s3, %s363_s17 }
  0x11   : > { %380 = vmatpush3.bf16.msk.msra.mxu0 (!%p142_p9), %vm376_vm2, %v375_v2  ;;  %s164_s10 = scalar_lea.vmem (!%p142_p9), [#allocation2], %s351_s7  ;;  %s581_s25 = scalar_lea.sflag (!%p142_p9), [#allocation3], %s162_s6 }
  0x12   : > { %s285_s11 = sshll.u32 (!%p142_p9), %s164_s10, 4  ;;  %s488_s16 = smov (!%p142_p9), [#allocation2]   ;;  %s574_s11 = int_to_ptr.vmem [resolvable:$true] %s285_s11 }
  0x13   : > { %s423_s26 = scalar_lea.vmem (!%p142_p9), %s574_s11, 256  ;;  %s427_s27 = sshll.u32 (!%p142_p9), %s488_s16, 4  ;;  %s428_s27 = int_to_ptr.vmem [resolvable:$false] %s427_s27 }
  0x14   : > { %p424_p11 = scmp.ne.s32.totalorder (!%p142_p9), %s574_s11, %s423_s26  ;;  %p430_p0 = scmp.lt.s32.totalorder (!%p142_p9), %s574_s11, %s428_s27 }
  0x15   : > { %s633_s28 = smov (!%p166_p10, %s352_s28), 3 }
  0x16   : > { %s353_s29 = sshll.u32 %s633_s28, 3  ;;  %p425_p12 = pnand %p424_p11, %p549_p5 }
  0x17   : > { %s169_s5 = scalar_lea.vmem %s622_s0, %s353_s29  ;;  %s429_s28 = scalar_lea.vmem %s428_s27, 512 }
  0x18   : > { %v172_v3 = vld [vmem:[%s169_s5] sm:$0xff]  ;;  %v173_v4 = vld [vmem:[%s169_s5 + $0x8] sm:$0xff]  ;;  %p426_p13 = pneg %p425_p12  ;;  %p431_p1 = scmp.lt.s32.totalorder %s429_s28, %s423_s26 }
  0x19   : > { %372 = vmatprep.mubr.msk.f32.mxu0 %vm183_vm3, %v172_v3 }
  0x1a   : > { %373 = vmatmul.mubr.msk.f32.vlgmr.msra.gmra.mrb[0].mxu0 %vm183_vm3, %v173_v4  ;;  %p432_p2 = por %p431_p1, %p430_p0 }
  0x1c   : > { %p433_p3 = pnand %p432_p2, %p426_p13 }
  0xed   : > { %v374_v6 = vpop.f32.mrb[0].mxu0 }
  0xee   : > { %v266_v7 = vadd.f32 %v374_v6, %v354_v5  ;;  %v260_v8 = vpop.f32.mrb[1].mxu0 }
  0xef   : > { %v261_v9 = vadd.f32 %v354_v5, %v260_v8 }
  0xf0   : > { %270 = vst [vmem:[%s164_s10 + $0x8] sm:$0xff] %v266_v7 }
  0xf1   : > { %269 = vst [vmem:[%s164_s10] sm:$0xff] %v261_v9 }
  0xf2   : > { %436 = shalt.err (!%p433_p3)
}
  0xf3   : > { %s437_s29 = scalar_lea.hbm %s579_s24, 256  ;;  %s441_s5 = scalar_lea.hbm %s625_s3, 512 }
  0xf4   : > { %p438_p4 = scmp.ne.s32.totalorder %s579_s24, %s437_s29  ;;  %p442_p9 = scmp.lt.u32.totalorder %s579_s24, %s625_s3 }
  0xf5   : > { %p443_p10 = scmp.lt.u32.totalorder %s441_s5, %s437_s29  ;;  %p445_p12 = scmp.lt.u32.totalorder %s437_s29, %s579_s24 }
  0xf6   : > { %p439_p7 = pnand %p438_p4, %p549_p5 }
  0xf7   : > { %p444_p11 = por %p443_p10, %p442_p9 }
  0xf8   : > { %p440_p8 = pneg %p439_p7 }
  0xf9   : > { %p446_p13 = por %p445_p12, %p444_p11 }
  0xfb   : > { %p447_p0 = pnand %p446_p13, %p440_p8 }
  0xfd   : > { %450 = shalt.err (!%p447_p0)
}
  0xfe   : > { %s489_s8 = smov 128   ;;  %s490_s9 = smov 8  }
  0xff   : > { %381 = dma.vmem_to_hbm [thread:$0]  (%p549_p5), %s574_s11, 256, %s579_s24, %s581_s25, %s489_s8, %s489_s8, %s490_s9  }
 0x100 PF: > { %p387_p1 = scmp.ge.s32.totalorder %s485_s15, 2  ;;  %s300_s10 = sand.u32 1, %s473_s12  }
 0x101   : > { %s301_s17 = scalar_lea.sflag [#allocation3], %s300_s10 }
 0x102   : > { %p384_p2 = pnand %p387_p1, %p553_p6 }
 0x104   : > { %468 = dma.done.wait (!%p384_p2), %s301_s17, 256  }
 0x105   : > { %470 = vsyncadd (!%p384_p2), %s301_s17, 4294967040  ;;  %p13_p3 = scmp.ge.s32.totalorder %s536_s18, 4   ;;  %s628_s12 = smov %s477_s13 }
 0x106   : > { %s629_s13 = smov %s481_s14  ;;  %s630_s14 = smov %s547_s21 }
 0x107   : > { %s631_s15 = smov %s536_s18  ;;  %15 = sbr.rel (!%p13_p3) target bundleno = 3 (0x3), region = 67 }
 0x10e   :  { %306 = vsyncpa [#allocation3], 1 }
 0x10f   :  { %308 = vsyncpa [#allocation3 + $0x1], 1 }

</bundles_post_ra>
